<compile_context>
chip_gen: v6e
topology: v6e:2x2x1
jax: 0.10.0
libtpu: 0.0.40
codegen_flags: <defaults>
</compile_context>

<pallas_src>
import functools
import math

import jax
import jax.numpy as jnp
from jax.experimental import pallas as pl
from jax.experimental.pallas import tpu as pltpu


def _nmt_norm_kernel(k_ref, x_ref, y_ref, out_ref, *, base, conf, k0, scale):
    """grid = (batch blocks [parallel], joint blocks [reduction, 'arbitrary'])."""
    jb = pl.program_id(1)

    @pl.when(jb == 0)
    def _():
        out_ref[...] = jnp.zeros_like(out_ref)

    def coord_loss(logits, k_col):
        # logits: (TB, TJ, C) f32, k_col: (TJ, 1) int32.  Returns sum_c(kl) per row.
        m = jnp.max(logits, axis=-1, keepdims=True)                          # (TB, TJ, 1)
        lse = m[..., 0] + jnp.log(jnp.sum(jnp.exp(logits - m), axis=-1))     # (TB, TJ)
        sum_logits = jnp.sum(logits, axis=-1)                                # (TB, TJ)
        col = jax.lax.broadcasted_iota(jnp.int32, logits.shape, 2)           # lane iota
        logit_k = jnp.sum(
            jnp.where(col == k_col[None, :, :], logits, 0.0), axis=-1)       # (TB, TJ)
        # sum_c t_c*(log t_c - logp_c) = K0 - base*sum_c(logits)
        #                                 - (conf-base)*logits[:,k] + logsumexp
        return k0 - base * sum_logits - (conf - base) * logit_k + lse

    x = x_ref[...].astype(jnp.float32)
    y = y_ref[...].astype(jnp.float32)
    per_row = coord_loss(x, k_ref[:, 0:1]) + coord_loss(y, k_ref[:, 1:2])    # (TB, TJ)

    out_ref[...] += jnp.sum(per_row, axis=1, keepdims=True)                  # (TB, 1)

    @pl.when(jb == pl.num_programs(1) - 1)
    def _():
        out_ref[...] = out_ref[...] * scale                                  # 1/(C*J)


def _choose_tiles(B, J, C, budget_bytes=8 * 1024 * 1024):
    """Largest (TB, TJ) dividing (B, J) whose double-buffered x/y blocks fit a VMEM
    budget that is safe on v5e/v6e (128 MiB) and v7x (64 MiB physical).  TB and TJ are
    constrained to be full-extent or multiples of 8 so every BlockSpec respects the
    (8, 128) layout rule."""
    def fits(tb, tj):
        return 2 * 2 * tb * tj * C * 4 <= budget_bytes   # 2 inputs x 2 buffers, f32

    # Shrink joints first (reduction axis), then the batch (parallel) axis.
    j_cands = [J] + [d for d in range(8 * (J // 8), 0, -8) if J % d == 0]
    b_cands = [B] + [d for d in range(8 * (B // 8), 0, -8) if B % d == 0]
    for tb in b_cands:
        for tj in j_cands:
            if fits(tb, tj):
                return tb, tj
    return b_cands[-1], j_cands[-1]


def nmt_norm_criterion(output_x, output_y, target, target_weight, label_smoothing=0.1):
    """output_x/output_y: (B, J, C) logits; target: (B, J, 2); target_weight: (B, J, 1)."""
    assert 0.0 < label_smoothing < 1.0, "only the KLDiv (label_smoothing > 0) branch runs"
    B, J, C = output_x.shape
    assert C > 1

    # --- glue: scalar labels (tiny B*J*2 reduction, stays in XLA) ----------------
    w = target_weight[..., 0]                                   # (B, J)
    s = jnp.mean(target * w[..., None], axis=0)                 # (J, 2)
    k = jnp.clip(s.astype(jnp.int32), 0, C - 1)                 # (J, 2), .long() semantics

    # --- compile-time constants of the smoothed target row ----------------------
    base = label_smoothing / (C - 1)
    conf = 1.0 - label_smoothing
    k0 = conf * math.log(conf) + (C - 1) * base * math.log(base)  # sum_c t_c*log(t_c)
    scale = 1.0 / (C * J)                                         # mean_c and /num_joints

    TB, TJ = _choose_tiles(B, J, C)
    grid = (B // TB, J // TJ)

    kernel = functools.partial(_nmt_norm_kernel, base=base, conf=conf, k0=k0, scale=scale)

    out = pl.pallas_call(
        kernel,
        out_shape=jax.ShapeDtypeStruct((B, 1), jnp.float32),
        grid=grid,
        in_specs=[
            pl.BlockSpec((TJ, 2), lambda b, j: (j, 0)),           # labels per joint block
            pl.BlockSpec((TB, TJ, C), lambda b, j: (b, j, 0)),    # x logits, native layout
            pl.BlockSpec((TB, TJ, C), lambda b, j: (b, j, 0)),    # y logits, native layout
        ],
        out_specs=pl.BlockSpec((TB, 1), lambda b, j: (b, 0)),     # VMEM-resident over joints
        compiler_params=pltpu.CompilerParams(
            dimension_semantics=("parallel", "arbitrary"),
        ),
    )(k, output_x, output_y)
    return out[:, 0]                                              # (B,)


def nmt_norm_criterion_ref(output_x, output_y, target, target_weight, label_smoothing=0.1):
    """Pure-JAX reference mirroring the PyTorch forward (KLDiv branch)."""
    B, J, C = output_x.shape
    w = target_weight[..., 0]
    base = label_smoothing / (C - 1)
    conf = 1.0 - label_smoothing
    loss = jnp.zeros((B,), jnp.float32)
    for j in range(J):
        for coord, out in ((0, output_x), (1, output_y)):
            s = jnp.mean(target[:, j, coord] * w[:, j])
            kidx = jnp.clip(s.astype(jnp.int32), 0, C - 1)
            logp = jax.nn.log_softmax(out[:, j, :], axis=1)
            t = jnp.where(jnp.arange(C) == kidx, conf, base)
            kl = t[None, :] * (jnp.log(t)[None, :] - logp)
            loss = loss + jnp.mean(kl, axis=1)
    return loss / J


if __name__ == "__main__":
    B, J, C = 8, 4, 128          # batch, num_joints, num classification bins
    label_smoothing = 0.1

    key = jax.random.PRNGKey(0)
    k1, k2, k3, k4 = jax.random.split(key, 4)
    output_x = jax.random.normal(k1, (B, J, C), dtype=jnp.float32)
    output_y = jax.random.normal(k2, (B, J, C), dtype=jnp.float32)
    target = jax.random.uniform(k3, (B, J, 2), dtype=jnp.float32, minval=0.0, maxval=float(C))
    target_weight = jax.random.uniform(k4, (B, J, 1), dtype=jnp.float32)

    loss = nmt_norm_criterion(output_x, output_y, target, target_weight, label_smoothing)
    loss = jax.block_until_ready(loss)

    ref = nmt_norm_criterion_ref(output_x, output_y, target, target_weight, label_smoothing)
    assert loss.shape == (B,)
    assert jnp.allclose(loss, ref, atol=1e-5, rtol=1e-4), (loss, ref)

    print("KERNEL_OK")
</pallas_src>

<mosaic_0001>
module attributes {stable_mosaic.version = 11 : i64} {
  func.func @_nmt_norm_kernel(%arg0: i32, %arg1: i32, %arg2: memref<4x2xi32, #tpu.memory_space<vmem>>, %arg3: memref<8x4x128xf32, #tpu.memory_space<vmem>>, %arg4: memref<8x4x128xf32, #tpu.memory_space<vmem>>, %arg5: memref<8x1xf32, #tpu.memory_space<vmem>>) attributes {dimension_semantics = [#tpu.dimension_semantics<parallel>, #tpu.dimension_semantics<arbitrary>], iteration_bounds = array<i64: 1, 1>, scalar_prefetch = 0 : i64, scratch_operands = 0 : i64, tpu.core_type = #tpu.core_type<tc>, window_params = [{transform_indices = @transform_0, window_bounds = array<i64: 4, 2>}, {transform_indices = @transform_1, window_bounds = array<i64: 8, 4, 128>}, {transform_indices = @transform_2, window_bounds = array<i64: 8, 4, 128>}, {transform_indices = @transform_3, window_bounds = array<i64: 8, 1>}]} {
    %c0_i32 = arith.constant 0 : i32
    %0 = arith.cmpi eq, %arg1, %c0_i32 : i32
    %1 = arith.extui %0 : i1 to i32
    %c0_i32_0 = arith.constant 0 : i32
    %2 = arith.cmpi ne, %1, %c0_i32_0 : i32
    scf.if %2 {
      %cst_31 = arith.constant 0.000000e+00 : f32
      %66 = vector.broadcast %cst_31 : f32 to vector<8x1xf32>
      %c0_32 = arith.constant 0 : index
      %c0_33 = arith.constant 0 : index
      %67 = vector.load %arg5[%c0_32, %c0_33] : memref<8x1xf32, #tpu.memory_space<vmem>>, vector<8x1xf32>
      tpu.vector_store %arg5[%c0_32, %c0_33], %66 {strides = array<i32>} : memref<8x1xf32, #tpu.memory_space<vmem>>, vector<8x1xf32>,
    } else {
    }
    %c0 = arith.constant 0 : index
    %c0_1 = arith.constant 0 : index
    %c0_2 = arith.constant 0 : index
    %3 = vector.load %arg3[%c0, %c0_1, %c0_2] : memref<8x4x128xf32, #tpu.memory_space<vmem>>, vector<8x4x128xf32>
    %c0_3 = arith.constant 0 : index
    %c0_4 = arith.constant 0 : index
    %c0_5 = arith.constant 0 : index
    %4 = vector.load %arg4[%c0_3, %c0_4, %c0_5] : memref<8x4x128xf32, #tpu.memory_space<vmem>>, vector<8x4x128xf32>
    %c0_6 = arith.constant 0 : index
    %c0_7 = arith.constant 0 : index
    %5 = vector.load %arg2[%c0_6, %c0_7] : memref<4x2xi32, #tpu.memory_space<vmem>>, vector<4x1xi32>
    %cst = arith.constant dense<0xFF800000> : vector<8x4xf32>
    %6 = vector.multi_reduction <maximumf>, %3, %cst [2] : vector<8x4x128xf32> to vector<8x4xf32>
    %7 = vector.shape_cast %6 : vector<8x4xf32> to vector<8x4x1xf32>
    %8 = vector.shape_cast %7 : vector<8x4x1xf32> to vector<8x4xf32>
    %9 = vector.broadcast %7 : vector<8x4x1xf32> to vector<8x4x128xf32>
    %10 = arith.subf %3, %9 : vector<8x4x128xf32>
    %11 = math.exp %10 : vector<8x4x128xf32>
    %cst_8 = arith.constant dense<0.000000e+00> : vector<8x4xf32>
    %12 = vector.multi_reduction <add>, %11, %cst_8 [2] : vector<8x4x128xf32> to vector<8x4xf32>
    %13 = math.log %12 : vector<8x4xf32>
    %14 = arith.addf %8, %13 : vector<8x4xf32>
    %cst_9 = arith.constant dense<0.000000e+00> : vector<8x4xf32>
    %15 = vector.multi_reduction <add>, %3, %cst_9 [2] : vector<8x4x128xf32> to vector<8x4xf32>
    %16 = tpu.iota {dimensions = array<i32: 2>} : vector<8x4x128xi32>
    %17 = vector.shape_cast %5 : vector<4x1xi32> to vector<1x4x1xi32>
    %18 = vector.broadcast %17 : vector<1x4x1xi32> to vector<8x4x128xi32>
    %19 = arith.cmpi eq, %16, %18 : vector<8x4x128xi32>
    %cst_10 = arith.constant 0.000000e+00 : f32
    %20 = vector.broadcast %cst_10 : f32 to vector<8x4x128xf32>
    %21 = arith.select %19, %3, %20 : vector<8x4x128xi1>, vector<8x4x128xf32>
    %cst_11 = arith.constant dense<0.000000e+00> : vector<8x4xf32>
    %22 = vector.multi_reduction <add>, %21, %cst_11 [2] : vector<8x4x128xf32> to vector<8x4xf32>
    %cst_12 = arith.constant 7.87401571E-4 : f32
    %23 = vector.broadcast %cst_12 : f32 to vector<8x4xf32>
    %24 = arith.mulf %23, %15 : vector<8x4xf32>
    %cst_13 = arith.constant -0.809501707 : f32
    %25 = vector.broadcast %cst_13 : f32 to vector<8x4xf32>
    %26 = arith.subf %25, %24 : vector<8x4xf32>
    %cst_14 = arith.constant 0.899212599 : f32
    %27 = vector.broadcast %cst_14 : f32 to vector<8x4xf32>
    %28 = arith.mulf %27, %22 : vector<8x4xf32>
    %29 = arith.subf %26, %28 : vector<8x4xf32>
    %30 = arith.addf %29, %14 : vector<8x4xf32>
    %c0_15 = arith.constant 0 : index
    %c1 = arith.constant 1 : index
    %31 = vector.load %arg2[%c0_15, %c1] : memref<4x2xi32, #tpu.memory_space<vmem>>, vector<4x1xi32>
    %cst_16 = arith.constant dense<0xFF800000> : vector<8x4xf32>
    %32 = vector.multi_reduction <maximumf>, %4, %cst_16 [2] : vector<8x4x128xf32> to vector<8x4xf32>
    %33 = vector.shape_cast %32 : vector<8x4xf32> to vector<8x4x1xf32>
    %34 = vector.shape_cast %33 : vector<8x4x1xf32> to vector<8x4xf32>
    %35 = vector.broadcast %33 : vector<8x4x1xf32> to vector<8x4x128xf32>
    %36 = arith.subf %4, %35 : vector<8x4x128xf32>
    %37 = math.exp %36 : vector<8x4x128xf32>
    %cst_17 = arith.constant dense<0.000000e+00> : vector<8x4xf32>
    %38 = vector.multi_reduction <add>, %37, %cst_17 [2] : vector<8x4x128xf32> to vector<8x4xf32>
    %39 = math.log %38 : vector<8x4xf32>
    %40 = arith.addf %34, %39 : vector<8x4xf32>
    %cst_18 = arith.constant dense<0.000000e+00> : vector<8x4xf32>
    %41 = vector.multi_reduction <add>, %4, %cst_18 [2] : vector<8x4x128xf32> to vector<8x4xf32>
    %42 = tpu.iota {dimensions = array<i32: 2>} : vector<8x4x128xi32>
    %43 = vector.shape_cast %31 : vector<4x1xi32> to vector<1x4x1xi32>
    %44 = vector.broadcast %43 : vector<1x4x1xi32> to vector<8x4x128xi32>
    %45 = arith.cmpi eq, %42, %44 : vector<8x4x128xi32>
    %cst_19 = arith.constant 0.000000e+00 : f32
    %46 = vector.broadcast %cst_19 : f32 to vector<8x4x128xf32>
    %47 = arith.select %45, %4, %46 : vector<8x4x128xi1>, vector<8x4x128xf32>
    %cst_20 = arith.constant dense<0.000000e+00> : vector<8x4xf32>
    %48 = vector.multi_reduction <add>, %47, %cst_20 [2] : vector<8x4x128xf32> to vector<8x4xf32>
    %cst_21 = arith.constant 7.87401571E-4 : f32
    %49 = vector.broadcast %cst_21 : f32 to vector<8x4xf32>
    %50 = arith.mulf %49, %41 : vector<8x4xf32>
    %cst_22 = arith.constant -0.809501707 : f32
    %51 = vector.broadcast %cst_22 : f32 to vector<8x4xf32>
    %52 = arith.subf %51, %50 : vector<8x4xf32>
    %cst_23 = arith.constant 0.899212599 : f32
    %53 = vector.broadcast %cst_23 : f32 to vector<8x4xf32>
    %54 = arith.mulf %53, %48 : vector<8x4xf32>
    %55 = arith.subf %52, %54 : vector<8x4xf32>
    %56 = arith.addf %55, %40 : vector<8x4xf32>
    %57 = arith.addf %30, %56 : vector<8x4xf32>
    %c0_24 = arith.constant 0 : index
    %c0_25 = arith.constant 0 : index
    %58 = vector.load %arg5[%c0_24, %c0_25] : memref<8x1xf32, #tpu.memory_space<vmem>>, vector<8x1xf32>
    %cst_26 = arith.constant dense<0.000000e+00> : vector<8xf32>
    %59 = vector.multi_reduction <add>, %57, %cst_26 [1] : vector<8x4xf32> to vector<8xf32>
    %60 = vector.shape_cast %59 : vector<8xf32> to vector<8x1xf32>
    %61 = arith.addf %58, %60 : vector<8x1xf32>
    %c0_27 = arith.constant 0 : index
    %c0_28 = arith.constant 0 : index
    %62 = vector.load %arg5[%c0_27, %c0_28] : memref<8x1xf32, #tpu.memory_space<vmem>>, vector<8x1xf32>
    tpu.vector_store %arg5[%c0_27, %c0_28], %61 {strides = array<i32>} : memref<8x1xf32, #tpu.memory_space<vmem>>, vector<8x1xf32>,
    %c0_i32_29 = arith.constant 0 : i32
    %63 = arith.cmpi eq, %arg1, %c0_i32_29 : i32
    %64 = arith.extui %63 : i1 to i32
    %c0_i32_30 = arith.constant 0 : i32
    %65 = arith.cmpi ne, %64, %c0_i32_30 : i32
    scf.if %65 {
      %c0_31 = arith.constant 0 : index
      %c0_32 = arith.constant 0 : index
      %66 = vector.load %arg5[%c0_31, %c0_32] : memref<8x1xf32, #tpu.memory_space<vmem>>, vector<8x1xf32>
      %cst_33 = arith.constant 0.001953125 : f32
      %67 = vector.broadcast %cst_33 : f32 to vector<8x1xf32>
      %68 = arith.mulf %66, %67 : vector<8x1xf32>
      %c0_34 = arith.constant 0 : index
      %c0_35 = arith.constant 0 : index
      %69 = vector.load %arg5[%c0_34, %c0_35] : memref<8x1xf32, #tpu.memory_space<vmem>>, vector<8x1xf32>
      tpu.vector_store %arg5[%c0_34, %c0_35], %68 {strides = array<i32>} : memref<8x1xf32, #tpu.memory_space<vmem>>, vector<8x1xf32>,
    } else {
    }
    return
  }
  func.func @transform_0(%arg0: i32, %arg1: i32) -> (i32, i32) {
    %c0_i32 = arith.constant 0 : i32
    %c0_i32_0 = arith.constant 0 : i32
    return %arg1, %c0_i32 : i32, i32
  }
  func.func @transform_1(%arg0: i32, %arg1: i32) -> (i32, i32, i32) {
    %c0_i32 = arith.constant 0 : i32
    %c0_i32_0 = arith.constant 0 : i32
    return %arg0, %arg1, %c0_i32 : i32, i32, i32
  }
  func.func @transform_2(%arg0: i32, %arg1: i32) -> (i32, i32, i32) {
    %c0_i32 = arith.constant 0 : i32
    %c0_i32_0 = arith.constant 0 : i32
    return %arg0, %arg1, %c0_i32 : i32, i32, i32
  }
  func.func @transform_3(%arg0: i32, %arg1: i32) -> (i32, i32) {
    %c0_i32 = arith.constant 0 : i32
    %c0_i32_0 = arith.constant 0 : i32
    return %arg0, %c0_i32 : i32, i32
  }
}

</mosaic_0001>

<bundles_post_ra>
// kernel: tpu_custom_call.1
= control target key start
LH: loop header
LB: loop body
LE: loop exit
PB: predicated region body
PF: predicated region fallthrough
CT: control target
= control target key end

     0   :  { %8 = vsyncpa [#allocation3], 0  ;;  %s1039_s0 = inlined_call_operand.vmem [shape: s32[4,2], index: 0, kind: input, shape index: {}]   ;;  %s1040_s1 = inlined_call_operand.hbm [shape: f32[8,4,128], index: 1, kind: input, shape index: {}]   ;;  %s1041_s2 = inlined_call_operand.hbm [shape: f32[8,4,128], index: 2, kind: input, shape index: {}]   ;;  %s1042_s3 = inlined_call_operand.vmem [shape: f32[8,1], index: 3, kind: output, shape index: {}]  }
   0x1   :  { %9 = vsyncpa [#allocation5], 0  ;;  %s661_s12 = smov [#allocation2]  }
   0x2   :  { %s17_s13 = sshll.u32 %s661_s12, 4  ;;  %s18_s13 = int_to_ptr.vmem [resolvable:$true] %s17_s13 }
   0x3   :  { %s625_s14 = scalar_lea.vmem %s18_s13, 512  ;;  %p630_p1 = scmp.lt.s32.totalorder %s18_s13, %s18_s13 }
   0x4   :  { %p626_p0 = scmp.ne.s32.totalorder %s18_s13, %s625_s14  ;;  %p631_p2 = scmp.lt.s32.totalorder %s625_s14, %s625_s14 }
   0x6   :  { %p632_p3 = por %p631_p2, %p630_p1 }
   0x8   :  { %p633_p4 = pnand %p632_p3, %p626_p0 }
   0xa   :  { %636 = shalt.err (!%p633_p4)
}
   0xb   :  { %s662_s15 = smov 64   ;;  %s663_s16 = smov 4  }
   0xc   :  { %23 = dma.hbm_to_vmem [thread:$0]  %s1040_s1, 512, %s18_s13, [#allocation3], %s662_s15, %s662_s15, %s663_s16  }
   0xd   :  { %s664_s19 = smov [#allocation4]  }
   0xe   :  { %s29_s20 = sshll.u32 %s664_s19, 4  ;;  %s30_s20 = int_to_ptr.vmem [resolvable:$true] %s29_s20 }
   0xf   :  { %s645_s21 = scalar_lea.vmem %s30_s20, 512  ;;  %p650_p6 = scmp.lt.s32.totalorder %s30_s20, %s30_s20 }
  0x10   :  { %p646_p5 = scmp.ne.s32.totalorder %s30_s20, %s645_s21  ;;  %p651_p7 = scmp.lt.s32.totalorder %s645_s21, %s645_s21 }
  0x12   :  { %p652_p8 = por %p651_p7, %p650_p6 }
  0x14   :  { %p653_p9 = pnand %p652_p8, %p646_p5 }
  0x16   :  { %656 = shalt.err (!%p653_p9)
}
  0x17   :  { %35 = dma.hbm_to_vmem [thread:$0]  %s1041_s2, 512, %s30_s20, [#allocation5], %s662_s15, %s662_s15, %s663_s16  }
  0x18   :  { %657 = dma.done.wait [#allocation3], 512  }
  0x19   :  { %658 = vsyncadd [#allocation3], 4294966784 }
  0x1a   :  { %659 = dma.done.wait [#allocation5], 512  }
  0x1b   :  { %660 = vsyncadd [#allocation5], 4294966784  ;;  %v665_v0 = vmov 0   ;;  %v666_v1 = vmov 1   ;;  %vm65_vm0 = vcmask 1043456   ;;  %vm46_vm3 = vcmask 7168  }
  0x1c   :  { %550 = vset.pattern.permute.xlu0 %v665_v0  ;;  %551 = vset.pattern.permute.xlu1 %v666_v1  ;;  %v694_v2 = vld [vmem:[#allocation2] sm:$0xf]  ;;  %v696_v3 = vld [vmem:[#allocation2 + $0x4] sm:$0xf]  ;;  %v710_v10 = vld [vmem:[#allocation2 + $0x8] sm:$0xf] }
  0x1d   :  { %v698_v4 = vld [vmem:[#allocation4] sm:$0xf]  ;;  %v66_v5 = vsel %vm65_vm0, %v694_v2, -inf  ;;  %v704_v7 = vld [vmem:[#allocation4 + $0x4] sm:$0xf]  ;;  %v69_v8 = vsel %vm65_vm0, %v696_v3, -inf }
  0x1e   :  { %v264_v6 = vsel %vm65_vm0, %v698_v4, -inf  ;;  %67 = vmax.xlane.f32.xlu0 %v66_v5  ;;  %v267_v9 = vsel %vm65_vm0, %v704_v7, -inf  ;;  %v712_v11 = vld [vmem:[#allocation4 + $0x8] sm:$0xf]  ;;  %v72_v12 = vsel %vm65_vm0, %v710_v10, -inf  ;;  %v162_v35 = vsel %vm65_vm0, %v694_v2, 0.0 }
  0x1f   :  { %265 = vmax.xlane.f32.xlu1 %v264_v6  ;;  %v270_v13 = vsel %vm65_vm0, %v712_v11, -inf  ;;  %v718_v14 = vld [vmem:[#allocation2 + $0xc] sm:$0xf]  ;;  %v726_v18 = vld [vmem:[#allocation2 + $0x10] sm:$0xf]  ;;  %v165_v36 = vsel %vm65_vm0, %v696_v3, 0.0  ;;  %v186_v6 = vlaneseq }
  0x20   :  { %v720_v15 = vld [vmem:[#allocation4 + $0xc] sm:$0xf]  ;;  %v75_v16 = vsel %vm65_vm0, %v718_v14, -inf  ;;  %v728_v19 = vld [vmem:[#allocation4 + $0x10] sm:$0xf]  ;;  %v78_v20 = vsel %vm65_vm0, %v726_v18, -inf }
  0x21   :  { %v273_v17 = vsel %vm65_vm0, %v720_v15, -inf  ;;  %v276_v21 = vsel %vm65_vm0, %v728_v19, -inf  ;;  %v734_v22 = vld [vmem:[#allocation2 + $0x14] sm:$0xf]  ;;  %v742_v26 = vld [vmem:[#allocation2 + $0x18] sm:$0xf] }
  0x22   :  { %70 = vmax.xlane.f32.xlu0 %v69_v8  ;;  %v736_v23 = vld [vmem:[#allocation4 + $0x14] sm:$0xf]  ;;  %v81_v24 = vsel %vm65_vm0, %v734_v22, -inf  ;;  %v744_v27 = vld [vmem:[#allocation4 + $0x18] sm:$0xf]  ;;  %v84_v28 = vsel %vm65_vm0, %v742_v26, -inf }
  0x23   :  { %268 = vmax.xlane.f32.xlu1 %v267_v9  ;;  %v279_v25 = vsel %vm65_vm0, %v736_v23, -inf  ;;  %v282_v29 = vsel %vm65_vm0, %v744_v27, -inf  ;;  %v750_v30 = vld [vmem:[#allocation2 + $0x1c] sm:$0xf]  ;;  %v64_v34 = vld [vmem:[%s1039_s0] sm:$0xf] }
  0x24   :  { %v752_v31 = vld [vmem:[#allocation4 + $0x1c] sm:$0xf]  ;;  %v87_v32 = vsel %vm65_vm0, %v750_v30, -inf  ;;  %v360_v37 = vsel %vm65_vm0, %v698_v4, 0.0  ;;  %v363_v38 = vsel %vm65_vm0, %v704_v7, 0.0  ;;  %v168_v39 = vsel %vm65_vm0, %v710_v10, 0.0 }
  0x25   :  { %v285_v33 = vsel %vm65_vm0, %v752_v31, -inf  ;;  %v366_v40 = vsel %vm65_vm0, %v712_v11, 0.0  ;;  %v171_v41 = vsel %vm65_vm0, %v718_v14, 0.0  ;;  %v369_v42 = vsel %vm65_vm0, %v720_v15, 0.0 }
  0x26   :  { %73 = vmax.xlane.f32.xlu0 %v72_v12  ;;  %v174_v43 = vsel %vm65_vm0, %v726_v18, 0.0  ;;  %v372_v44 = vsel %vm65_vm0, %v728_v19, 0.0  ;;  %v177_v45 = vsel %vm65_vm0, %v734_v22, 0.0  ;;  %v375_v46 = vsel %vm65_vm0, %v736_v23, 0.0 }
  0x27   :  { %271 = vmax.xlane.f32.xlu1 %v270_v13  ;;  %v180_v47 = vsel %vm65_vm0, %v742_v26, 0.0  ;;  %vm509_vm4 = vcmask 1041409   ;;  %vm511_vm5 = vcmask 1042434   ;;  %vm513_vm6 = vcmask 1043459  }
  0x28   :  { %vm515_vm7 = vcmask 1044484   ;;  %vm517_vm8 = vcmask 1045509   ;;  %vm519_vm9 = vcmask 1046534   ;;  %vm521_vm10 = vcmask 1047559  }
  0x29   :  { %vm524_vm11 = vcmask 31744  }
  0x2a   :  { %76 = vmax.xlane.f32.xlu0 %v75_v16  ;;  %v826_v16 = vand.u32 127, %v186_v6 }
  0x2b   :  { %274 = vmax.xlane.f32.xlu1 %v273_v17 }
  0x2e   :  { %79 = vmax.xlane.f32.xlu0 %v78_v20 }
  0x2f   :  { %277 = vmax.xlane.f32.xlu1 %v276_v21 }
  0x32   :  { %82 = vmax.xlane.f32.xlu0 %v81_v24 }
  0x33   :  { %280 = vmax.xlane.f32.xlu1 %v279_v25 }
  0x36   :  { %85 = vmax.xlane.f32.xlu0 %v84_v28 }
  0x37   :  { %283 = vmax.xlane.f32.xlu1 %v282_v29 }
  0x3a   :  { %88 = vmax.xlane.f32.xlu0 %v87_v32 }
  0x3b   :  { %286 = vmax.xlane.f32.xlu1 %v285_v33 }
  0x4c   :  { %385 = vperm.xlu1 %551, %v64_v34  }
  0x50   :  { %189 = vperm.xlu0 %550, %v64_v34  }
  0x54   :  { %552 = vset.pattern.permute.xlu0 %v666_v1 }
  0x6f   :  { %163 = vadd.xlane.f32.xlu0 %v162_v35 }
  0x70   :  { %166 = vadd.xlane.f32.xlu1 %v165_v36 }
  0x73   :  { %361 = vadd.xlane.f32.xlu0 %v360_v37 }
  0x74   :  { %364 = vadd.xlane.f32.xlu1 %v363_v38 }
  0x77   :  { %169 = vadd.xlane.f32.xlu0 %v168_v39 }
  0x78   :  { %367 = vadd.xlane.f32.xlu1 %v366_v40 }
  0x7b   :  { %172 = vadd.xlane.f32.xlu0 %v171_v41 }
  0x7c   :  { %370 = vadd.xlane.f32.xlu1 %v369_v42 }
  0x7f   :  { %175 = vadd.xlane.f32.xlu0 %v174_v43 }
  0x83   :  { %373 = vadd.xlane.f32.xlu0 %v372_v44 }
  0x87   :  { %178 = vadd.xlane.f32.xlu0 %v177_v45 }
  0x8b   :  { %376 = vadd.xlane.f32.xlu0 %v375_v46 }
  0x8f   :  { %181 = vadd.xlane.f32.xlu0 %v180_v47 }
  0xa7   :  { %v787_v48 = vpop.xlane.xlu0 %67 }
  0xa8   :  { %v789_v49 = vpop.xlane.xlu1 %265  ;;  %v90_v38 = vsub.f32 %v694_v2, %v787_v48 }
  0xa9   :  { %v288_v42 = vsub.f32 %v698_v4, %v789_v49 }
  0xaa   :  { %v98_v43 = vmul.f32 1.442695, %v90_v38 }
  0xab   :  { %v791_v50 = vpop.xlane.xlu0 %70 }
  0xac   :  { %v793_v51 = vpop.xlane.xlu1 %268  ;;  %v91_v60 = vsub.f32 %v696_v3, %v791_v50 }
  0xae   :  { %v100_v63 = vmul.f32 1.442695, %v91_v60  ;;  %v296_v60 = vmul.f32 1.442695, %v288_v42 }
  0xaf   :  { %v795_v52 = vpop.xlane.xlu0 %73 }
  0xb0   :  { %v797_v53 = vpop.xlane.xlu1 %271  ;;  %553 = vpow2.f32 %v100_v63  ;;  %v289_v63 = vsub.f32 %v704_v7, %v793_v51 }
  0xb3   :  { %v799_v54 = vpop.xlane.xlu0 %76 }
  0xb4   :  { %v801_v55 = vpop.xlane.xlu1 %274 }
  0xb7   :  { %v803_v56 = vpop.xlane.xlu0 %79 }
  0xb8   :  { %v805_v57 = vpop.xlane.xlu1 %277  ;;  %v94_v0 = vsub.f32 %v726_v18, %v803_v56 }
  0xb9   :  { %v292_v42 = vsub.f32 %v728_v19, %v805_v57 }
  0xba   :  { %v106_v8 = vmul.f32 1.442695, %v94_v0 }
  0xbb   :  { %v807_v58 = vpop.xlane.xlu0 %82 }
  0xbc   :  { %v809_v59 = vpop.xlane.xlu1 %280  ;;  %v95_v5 = vsub.f32 %v734_v22, %v807_v58  ;;  %555 = vpow2.f32 %v106_v8  ;;  %v92_v8 = vsub.f32 %v710_v10, %v795_v52 }
  0xbd   :  { %v554_v40 = vpop.eup %553 }
  0xbe   :  { %v108_v13 = vmul.f32 1.442695, %v95_v5  ;;  %v117_v44 = vsel %vm65_vm0, %v554_v40, 0.0 }
  0xbf   :  { %v815_v62 = vpop.xlane.xlu0 %85 }
  0xc0   :  { %v813_v61 = vpop.xlane.xlu1 %283  ;;  %v96_v17 = vsub.f32 %v742_v26, %v815_v62  ;;  %557 = vpow2.f32 %v108_v13 }
  0xc2   :  { %v110_v33 = vmul.f32 1.442695, %v96_v17 }
  0xc3   :  { %v823_v9 = vpop.xlane.xlu0 %88 }
  0xc4   :  { %v819_v1 = vpop.xlane.xlu1 %286  ;;  %v97_v34 = vsub.f32 %v750_v30, %v823_v9  ;;  %559 = vpow2.f32 %v110_v33 }
  0xc6   :  { %v112_v39 = vmul.f32 1.442695, %v97_v34 }
  0xc8   :  { %v386_v12 = vpop.permute.xlu1 %385  ;;  %561 = vpow2.f32 %v112_v39 }
  0xc9   :  { %vm831_vm1 = vcmp.eq.s32.totalorder %v826_v16, %v386_v12  ;;  %v556_v46 = vpop.eup %555  ;;  %563 = vpow2.f32 %v98_v43  ;;  %v298_v12 = vmul.f32 1.442695, %v289_v63 }
  0xca   :  { %v388_v29 = vsel %vm831_vm1, %v698_v4, 0.0  ;;  %v389_v32 = vsel %vm831_vm1, %v704_v7, 0.0  ;;  %v126_v4 = vsel %vm65_vm0, %v556_v46, 0.0  ;;  %565 = vpow2.f32 %v296_v60 }
  0xcb   :  { %v190_v21 = vpop.permute.xlu0 %189  ;;  %v396_v36 = vsel %vm65_vm0, %v388_v29, 0.0  ;;  %v399_v37 = vsel %vm65_vm0, %v389_v32, 0.0  ;;  %567 = vpow2.f32 %v298_v12  ;;  %v304_v46 = vmul.f32 1.442695, %v292_v42 }
  0xcc   :  { %vm836_vm2 = vcmp.eq.s32.totalorder %v826_v16, %v190_v21  ;;  %v391_v21 = vsel %vm831_vm1, %v720_v15, 0.0 }
  0xcd   :  { %v193_v25 = vsel %vm836_vm2, %v696_v3, 0.0  ;;  %v192_v28 = vsel %vm836_vm2, %v694_v2, 0.0  ;;  %v194_v41 = vsel %vm836_vm2, %v710_v10, 0.0  ;;  %v390_v2 = vsel %vm831_vm1, %v712_v11, 0.0  ;;  %v558_v47 = vpop.eup %557 }
  0xce   :  { %v203_v35 = vsel %vm65_vm0, %v193_v25, 0.0  ;;  %v200_v3 = vsel %vm65_vm0, %v192_v28, 0.0  ;;  %v206_v45 = vsel %vm65_vm0, %v194_v41, 0.0  ;;  %v402_v0 = vsel %vm65_vm0, %v390_v2, 0.0 }
  0xcf   :  { %204 = vadd.xlane.f32.xlu0 %v203_v35  ;;  %201 = vadd.xlane.f32.xlu1 %v200_v3  ;;  %v195_v5 = vsel %vm836_vm2, %v718_v14, 0.0  ;;  %v129_v13 = vsel %vm65_vm0, %v558_v47, 0.0  ;;  %v290_v25 = vsub.f32 %v712_v11, %v797_v53  ;;  %v102_v28 = vmul.f32 1.442695, %v92_v8 }
  0xd0   :  { %v209_v17 = vsel %vm65_vm0, %v195_v5, 0.0  ;;  %v405_v10 = vsel %vm65_vm0, %v391_v21, 0.0  ;;  %v196_v33 = vsel %vm836_vm2, %v726_v18, 0.0  ;;  %v93_v35 = vsub.f32 %v718_v14, %v799_v54 }
  0xd1   :  { %v560_v7 = vpop.eup %559  ;;  %v300_v34 = vmul.f32 1.442695, %v290_v25  ;;  %569 = vpow2.f32 %v102_v28  ;;  %v212_v3 = vsel %vm65_vm0, %v196_v33, 0.0  ;;  %v291_v18 = vsub.f32 %v720_v15, %v801_v55 }
  0xd2   :  { %v132_v29 = vsel %vm65_vm0, %v560_v7, 0.0  ;;  %v104_v39 = vmul.f32 1.442695, %v93_v35  ;;  %v183_v14 = vsel %vm65_vm0, %v750_v30, 0.0  ;;  %v381_v15 = vsel %vm65_vm0, %v752_v31, 0.0 }
  0xd3   :  { %397 = vadd.xlane.f32.xlu0 %v396_v36  ;;  %400 = vadd.xlane.f32.xlu1 %v399_v37  ;;  %v378_v37 = vsel %vm65_vm0, %v744_v27, 0.0  ;;  %571 = vpow2.f32 %v300_v34  ;;  %v302_v41 = vmul.f32 1.442695, %v291_v18  ;;  %v198_v60 = vsel %vm836_vm2, %v742_v26, 0.0 }
  0xd4   :  { %573 = vpow2.f32 %v104_v39  ;;  %v199_v12 = vsel %vm836_vm2, %v750_v30, 0.0  ;;  %v295_v26 = vsub.f32 %v752_v31, %v819_v1  ;;  %v197_v39 = vsel %vm836_vm2, %v734_v22, 0.0 }
  0xd5   :  { %v562_v32 = vpop.eup %561  ;;  %575 = vpow2.f32 %v302_v41  ;;  %v215_v18 = vsel %vm65_vm0, %v197_v39, 0.0  ;;  %v395_v22 = vsel %vm831_vm1, %v752_v31, 0.0 }
  0xd6   :  { %v135_v11 = vsel %vm65_vm0, %v562_v32, 0.0  ;;  %v564_v36 = vpop.eup %563  ;;  %577 = vpow2.f32 %v304_v46  ;;  %v310_v25 = vmul.f32 1.442695, %v295_v26  ;;  %v417_v24 = vsel %vm65_vm0, %v395_v22, 0.0 }
  0xd7   :  { %118 = vadd.xlane.f32.xlu0 %v117_v44  ;;  %207 = vadd.xlane.f32.xlu1 %v206_v45  ;;  %v566_v38 = vpop.eup %565  ;;  %v114_v40 = vsel %vm65_vm0, %v564_v36, 0.0  ;;  %v293_v45 = vsub.f32 %v736_v23, %v809_v59 }
  0xd8   :  { %v312_v43 = vsel %vm65_vm0, %v566_v38, 0.0  ;;  %v568_v44 = vpop.eup %567 }
  0xd9   :  { %v315_v2 = vsel %vm65_vm0, %v568_v44, 0.0  ;;  %v306_v63 = vmul.f32 1.442695, %v293_v45  ;;  %v667_v44 = vmov 0.0  }
  0xda   :  { %47 = vst.msk [vmem:[%s1042_s3] sm:$0xff] %vm46_vm3, %v667_v44 }
  0xdb   :  { %127 = vadd.xlane.f32.xlu0 %v126_v4  ;;  %403 = vadd.xlane.f32.xlu1 %v402_v0  ;;  %v294_v4 = vsub.f32 %v744_v27, %v813_v61  ;;  %v218_v0 = vsel %vm65_vm0, %v198_v60, 0.0  ;;  %579 = vpow2.f32 %v306_v63 }
  0xde   :  { %v570_v47 = vpop.eup %569 }
  0xdf   :  { %130 = vadd.xlane.f32.xlu0 %v129_v13  ;;  %210 = vadd.xlane.f32.xlu1 %v209_v17  ;;  %v120_v5 = vsel %vm65_vm0, %v570_v47, 0.0  ;;  %v308_v13 = vmul.f32 1.442695, %v294_v4  ;;  %v221_v17 = vsel %vm65_vm0, %v199_v12, 0.0 }
  0xe0   :  { %v572_v8 = vpop.eup %571 }
  0xe1   :  { %v318_v7 = vsel %vm65_vm0, %v572_v8, 0.0  ;;  %v574_v21 = vpop.eup %573  ;;  %581 = vpow2.f32 %v308_v13 }
  0xe2   :  { %v123_v28 = vsel %vm65_vm0, %v574_v21, 0.0  ;;  %583 = vpow2.f32 %v310_v25 }
  0xe3   :  { %133 = vadd.xlane.f32.xlu0 %v132_v29  ;;  %406 = vadd.xlane.f32.xlu1 %v405_v10  ;;  %v576_v29 = vpop.eup %575 }
  0xe4   :  { %v321_v30 = vsel %vm65_vm0, %v576_v29, 0.0  ;;  %v578_v10 = vpop.eup %577 }
  0xe5   :  { %v324_v33 = vsel %vm65_vm0, %v578_v10, 0.0 }
  0xe7   :  { %136 = vadd.xlane.f32.xlu0 %v135_v11  ;;  %213 = vadd.xlane.f32.xlu1 %v212_v3 }
  0xe8   :  { %v580_v32 = vpop.eup %579 }
  0xe9   :  { %v327_v34 = vsel %vm65_vm0, %v580_v32, 0.0 }
  0xeb   :  { %379 = vadd.xlane.f32.xlu0 %v378_v37  ;;  %115 = vadd.xlane.f32.xlu1 %v114_v40  ;;  %v392_v37 = vsel %vm831_vm1, %v728_v19, 0.0  ;;  %v393_v40 = vsel %vm831_vm1, %v736_v23, 0.0  ;;  %v394_v19 = vsel %vm831_vm1, %v744_v27, 0.0 }
  0xec   :  { %v408_v38 = vsel %vm65_vm0, %v392_v37, 0.0  ;;  %v414_v41 = vsel %vm65_vm0, %v394_v19, 0.0 }
  0xee   :  { %v582_v35 = vpop.eup %581 }
  0xef   :  { %184 = vadd.xlane.f32.xlu0 %v183_v14  ;;  %313 = vadd.xlane.f32.xlu1 %v312_v43  ;;  %v330_v11 = vsel %vm65_vm0, %v582_v35, 0.0  ;;  %v584_v3 = vpop.eup %583  ;;  %v411_v14 = vsel %vm65_vm0, %v393_v40, 0.0 }
  0xf0   :  { %v333_v36 = vsel %vm65_vm0, %v584_v3, 0.0 }
  0xf3   :  { %382 = vadd.xlane.f32.xlu0 %v381_v15  ;;  %316 = vadd.xlane.f32.xlu1 %v315_v2 }
  0xf7   :  { %219 = vadd.xlane.f32.xlu0 %v218_v0  ;;  %121 = vadd.xlane.f32.xlu1 %v120_v5 }
  0xf8   :  { %v164_v42 = vpop.xlane.xlu0 %163 }
  0xf9   :  { %v167_v27 = vpop.xlane.xlu1 %166  ;;  %v224_v47 = vmul.f32 0.0007874016, %v164_v42 }
  0xfb   :  { %222 = vadd.xlane.f32.xlu0 %v221_v17  ;;  %319 = vadd.xlane.f32.xlu1 %v318_v7  ;;  %v232_v63 = vsub.f32 -0.8095017, %v224_v47 }
  0xfc   :  { %v362_v43 = vpop.xlane.xlu0 %361 }
  0xfd   :  { %v365_v45 = vpop.xlane.xlu1 %364  ;;  %v420_v42 = vmul.f32 0.0007874016, %v362_v43 }
  0xfe   :  { %v421_v0 = vmul.f32 0.0007874016, %v365_v45 }
  0xff   :  { %124 = vadd.xlane.f32.xlu1 %v123_v28  ;;  %v428_v47 = vsub.f32 -0.8095017, %v420_v42 }
 0x100   :  { %v170_v23 = vpop.xlane.xlu0 %169  ;;  %v429_v17 = vsub.f32 -0.8095017, %v421_v0  ;;  %v478_v0 = vshrl.u32 %v186_v6, 7 }
 0x101   :  { %v368_v31 = vpop.xlane.xlu1 %367  ;;  %v226_v8 = vmul.f32 0.0007874016, %v170_v23 }
 0x102   :  { %v422_v29 = vmul.f32 0.0007874016, %v368_v31 }
 0x103   :  { %322 = vadd.xlane.f32.xlu1 %v321_v30  ;;  %v234_v21 = vsub.f32 -0.8095017, %v226_v8 }
 0x104   :  { %v954_v15 = vpop.xlane.xlu0 %172 }
 0x105   :  { %v960_v2 = vpop.xlane.xlu1 %370 }
 0x107   :  { %325 = vadd.xlane.f32.xlu1 %v324_v33 }
 0x108   :  { %v956_v46 = vpop.xlane.xlu0 %175 }
 0x10b   :  { %328 = vadd.xlane.f32.xlu1 %v327_v34  ;;  %v430_v34 = vsub.f32 -0.8095017, %v422_v29 }
 0x10c   :  { %v958_v20 = vpop.xlane.xlu0 %373 }
 0x10f   :  { %331 = vadd.xlane.f32.xlu1 %v330_v11 }
 0x110   :  { %v962_v60 = vpop.xlane.xlu0 %178 }
 0x113   :  { %334 = vadd.xlane.f32.xlu1 %v333_v36 }
 0x114   :  { %v964_v13 = vpop.xlane.xlu0 %376 }
 0x117   :  { %409 = vadd.xlane.f32.xlu1 %v408_v38 }
 0x118   :  { %v968_v10 = vpop.xlane.xlu0 %181 }
 0x11b   :  { %216 = vadd.xlane.f32.xlu1 %v215_v18 }
 0x11f   :  { %412 = vadd.xlane.f32.xlu1 %v411_v14 }
 0x123   :  { %415 = vadd.xlane.f32.xlu1 %v414_v41 }
 0x127   :  { %418 = vadd.xlane.f32.xlu1 %v417_v24 }
 0x158   :  { %v202_v4 = vpop.xlane.xlu1 %201  ;;  %v205_v3 = vpop.xlane.xlu0 %204 }
 0x159   :  { %v240_v5 = vmul.f32 0.8992126, %v202_v4 }
 0x15b   :  { %v248_v12 = vsub.f32 %v232_v63, %v240_v5  ;;  %v225_v5 = vmul.f32 0.0007874016, %v167_v27 }
 0x15c   :  { %v401_v26 = vpop.xlane.xlu1 %400  ;;  %v398_v38 = vpop.xlane.xlu0 %397 }
 0x15d   :  { %v437_v7 = vmul.f32 0.8992126, %v401_v26  ;;  %v436_v63 = vmul.f32 0.8992126, %v398_v38 }
 0x15f   :  { %v966_v25 = vsub.f32 %v429_v17, %v437_v7  ;;  %v444_v43 = vsub.f32 %v428_v47, %v436_v63 }
 0x160   :  { %v208_v28 = vpop.xlane.xlu1 %207  ;;  %v119_v18 = vpop.xlane.xlu0 %118 }
 0x161   :  { %v242_v30 = vmul.f32 0.8992126, %v208_v28  ;;  %v241_v28 = vmul.f32 0.8992126, %v205_v3 }
 0x163   :  { %v970_v32 = vsub.f32 %v234_v21, %v242_v30 }
 0x164   :  { %v404_v33 = vpop.xlane.xlu1 %403  ;;  %v128_v19 = vpop.xlane.xlu0 %127 }
 0x165   :  { %v438_v35 = vmul.f32 0.8992126, %v404_v33  ;;  %v984_v33 = vsub.s32 %v826_v16, %v478_v0  ;;  %v423_v0 = vmul.f32 0.0007874016, %v960_v2 }
 0x167   :  { %v972_v11 = vsub.f32 %v430_v34, %v438_v35  ;;  %v233_v34 = vsub.f32 -0.8095017, %v225_v5  ;;  %v431_v2 = vsub.f32 -0.8095017, %v423_v0 }
 0x168   :  { %v974_v36 = vpop.xlane.xlu1 %210  ;;  %v131_v22 = vpop.xlane.xlu0 %130 }
 0x16c   :  { %v976_v37 = vpop.xlane.xlu1 %406  ;;  %v134_v8 = vpop.xlane.xlu0 %133 }
 0x170   :  { %v978_v39 = vpop.xlane.xlu1 %213 }
 0x174   :  { %v116_v40 = vpop.xlane.xlu1 %115 }
 0x175   :  { %585 = vlog2.f32 %v116_v40  ;;  %v249_v40 = vsub.f32 %v233_v34, %v241_v28 }
 0x176   :  { %587 = vlog2.f32 %v119_v18  ;;  %v137_v18 = vpop.xlane.xlu0 %136 }
 0x178   :  { %v314_v14 = vpop.xlane.xlu1 %313 }
 0x179   :  { %589 = vlog2.f32 %v314_v14 }
 0x17c   :  { %v317_v41 = vpop.xlane.xlu1 %316 }
 0x17d   :  { %591 = vlog2.f32 %v317_v41 }
 0x180   :  { %v122_v24 = vpop.xlane.xlu1 %121 }
 0x181   :  { %593 = vlog2.f32 %v122_v24 }
 0x182   :  { %v586_v23 = vpop.eup %585 }
 0x183   :  { %v139_v44 = vmul.f32 0.6931472, %v586_v23  ;;  %v588_v45 = vpop.eup %587 }
 0x184   :  { %v320_v31 = vpop.xlane.xlu1 %319  ;;  %v141_v26 = vmul.f32 0.6931472, %v588_v45 }
 0x185   :  { %595 = vlog2.f32 %v320_v31  ;;  %v154_v17 = vadd.f32 %v139_v44, %v787_v48  ;;  %v990_v44 = vpop.xlane.xlu0 %379  ;;  %v227_v31 = vmul.f32 0.0007874016, %v954_v15 }
 0x186   :  { %v590_v4 = vpop.eup %589  ;;  %v155_v35 = vadd.f32 %v141_v26, %v791_v50 }
 0x187   :  { %v337_v7 = vmul.f32 0.6931472, %v590_v4  ;;  %v256_v6 = vadd.f32 %v248_v12, %v154_v17 }
 0x188   :  { %v125_v21 = vpop.xlane.xlu1 %124  ;;  %v257_v41 = vadd.f32 %v249_v40, %v155_v35 }
 0x189   :  { %v352_v29 = vadd.f32 %v337_v7, %v789_v49  ;;  %597 = vlog2.f32 %v125_v21  ;;  %v235_v7 = vsub.f32 -0.8095017, %v227_v31  ;;  %v185_v21 = vpop.xlane.xlu0 %184 }
 0x18a   :  { %v592_v30 = vpop.eup %591  ;;  %599 = vlog2.f32 %v128_v19 }
 0x18b   :  { %v452_v27 = vadd.f32 %v444_v43, %v352_v29  ;;  %v339_v38 = vmul.f32 0.6931472, %v592_v30  ;;  %v439_v43 = vmul.f32 0.8992126, %v976_v37  ;;  %v228_v30 = vmul.f32 0.0007874016, %v956_v46 }
 0x18c   :  { %v323_v48 = vpop.xlane.xlu1 %322 }
 0x18d   :  { %v460_v14 = vadd.f32 %v452_v27, %v256_v6  ;;  %v353_v3 = vadd.f32 %v339_v38, %v793_v51  ;;  %601 = vlog2.f32 %v323_v48  ;;  %v447_v27 = vsub.f32 %v431_v2, %v439_v43  ;;  %v383_v40 = vpop.xlane.xlu0 %382 }
 0x18e   :  { %v594_v49 = vpop.eup %593  ;;  %v236_v46 = vsub.f32 -0.8095017, %v228_v30 }
 0x18f   :  { %v480_v24 = vrot.slane %v460_v14, %v984_v33  ;;  %v453_v16 = vadd.f32 %v966_v25, %v353_v3  ;;  %v143_v42 = vmul.f32 0.6931472, %v594_v49 }
 0x190   :  { %v326_v23 = vpop.xlane.xlu1 %325 }
 0x191   :  { %v461_v50 = vadd.f32 %v453_v16, %v257_v41  ;;  %603 = vlog2.f32 %v326_v23  ;;  %v156_v45 = vadd.f32 %v143_v42, %v795_v52  ;;  %v243_v52 = vmul.f32 0.8992126, %v974_v36 }
 0x192   :  { %v596_v12 = vpop.eup %595  ;;  %605 = vlog2.f32 %v131_v22  ;;  %v424_v36 = vmul.f32 0.0007874016, %v958_v20  ;;  %v229_v42 = vmul.f32 0.0007874016, %v962_v60 }
 0x193   :  { %v484_v19 = vrot.slane %v461_v50, %v984_v33  ;;  %v341_v51 = vmul.f32 0.6931472, %v596_v12  ;;  %v258_v5 = vadd.f32 %v970_v32, %v156_v45  ;;  %v251_v34 = vsub.f32 %v235_v7, %v243_v52 }
 0x194   :  { %v329_v47 = vpop.xlane.xlu1 %328  ;;  %v432_v41 = vsub.f32 -0.8095017, %v424_v36  ;;  %v425_v45 = vmul.f32 0.0007874016, %v964_v13  ;;  %v237_v60 = vsub.f32 -0.8095017, %v229_v42 }
 0x195   :  { %v354_v63 = vadd.f32 %v341_v51, %v797_v53  ;;  %v510_v4 = vsel %vm509_vm4, %v484_v19, %v480_v24  ;;  %607 = vlog2.f32 %v329_v47  ;;  %v220_v51 = vpop.xlane.xlu0 %219  ;;  %v231_v7 = vmul.f32 0.0007874016, %v185_v21 }
 0x196   :  { %v598_v25 = vpop.eup %597  ;;  %609 = vlog2.f32 %v134_v8  ;;  %v244_v8 = vmul.f32 0.8992126, %v978_v39  ;;  %v246_v52 = vmul.f32 0.8992126, %v220_v51  ;;  %v433_v13 = vsub.f32 -0.8095017, %v425_v45 }
 0x197   :  { %v454_v26 = vadd.f32 %v972_v11, %v354_v63  ;;  %v145_v17 = vmul.f32 0.6931472, %v598_v25  ;;  %v600_v15 = vpop.eup %599 }
 0x198   :  { %v332_v28 = vpop.xlane.xlu1 %331  ;;  %v147_v6 = vmul.f32 0.6931472, %v600_v15  ;;  %v252_v50 = vsub.f32 %v236_v46, %v244_v8 }
 0x199   :  { %v462_v53 = vadd.f32 %v454_v26, %v258_v5  ;;  %v157_v11 = vadd.f32 %v145_v17, %v799_v54  ;;  %611 = vlog2.f32 %v332_v28  ;;  %v223_v2 = vpop.xlane.xlu0 %222 }
 0x19a   :  { %v602_v29 = vpop.eup %601  ;;  %613 = vlog2.f32 %v137_v18  ;;  %v158_v20 = vadd.f32 %v147_v6, %v803_v56  ;;  %v427_v6 = vmul.f32 0.0007874016, %v383_v40 }
 0x19b   :  { %v488_v32 = vrot.slane %v462_v53, %v984_v33  ;;  %v343_v22 = vmul.f32 0.6931472, %v602_v29  ;;  %v259_v14 = vadd.f32 %v251_v34, %v157_v11 }
 0x19c   :  { %v335_v35 = vpop.xlane.xlu1 %334  ;;  %v260_v56 = vadd.f32 %v252_v50, %v158_v20 }
 0x19d   :  { %v355_v37 = vadd.f32 %v343_v22, %v801_v55  ;;  %v512_v38 = vsel %vm511_vm5, %v488_v32, %v510_v4  ;;  %615 = vlog2.f32 %v335_v35  ;;  %v230_v55 = vmul.f32 0.0007874016, %v968_v10 }
 0x19e   :  { %v604_v48 = vpop.eup %603  ;;  %v239_v35 = vsub.f32 -0.8095017, %v231_v7 }
 0x19f   :  { %v455_v3 = vadd.f32 %v447_v27, %v355_v37  ;;  %v345_v54 = vmul.f32 0.6931472, %v604_v48  ;;  %v606_v23 = vpop.eup %605  ;;  %v238_v0 = vsub.f32 -0.8095017, %v230_v55 }
 0x1a0   :  { %v410_v49 = vpop.xlane.xlu1 %409  ;;  %v149_v25 = vmul.f32 0.6931472, %v606_v23 }
 0x1a1   :  { %v463_v24 = vadd.f32 %v455_v3, %v259_v14  ;;  %v440_v16 = vmul.f32 0.8992126, %v410_v49  ;;  %v356_v18 = vadd.f32 %v345_v54, %v805_v57  ;;  %v426_v57 = vmul.f32 0.0007874016, %v990_v44 }
 0x1a2   :  { %v608_v19 = vpop.eup %607  ;;  %v159_v29 = vadd.f32 %v149_v25, %v807_v58  ;;  %v254_v27 = vsub.f32 %v238_v0, %v246_v52 }
 0x1a3   :  { %v492_v39 = vrot.slane %v463_v24, %v984_v33  ;;  %v448_v12 = vsub.f32 %v432_v41, %v440_v16  ;;  %v610_v10 = vpop.eup %609  ;;  %v347_v5 = vmul.f32 0.6931472, %v608_v19  ;;  %v434_v21 = vsub.f32 -0.8095017, %v426_v57 }
 0x1a4   :  { %v217_v31 = vpop.xlane.xlu1 %216  ;;  %v151_v30 = vmul.f32 0.6931472, %v610_v10  ;;  %v435_v41 = vsub.f32 -0.8095017, %v427_v6 }
 0x1a5   :  { %v456_v47 = vadd.f32 %v448_v12, %v356_v18  ;;  %v245_v63 = vmul.f32 0.8992126, %v217_v31  ;;  %v514_v4 = vsel %vm513_vm6, %v492_v39, %v512_v38  ;;  %v357_v11 = vadd.f32 %v347_v5, %v809_v59 }
 0x1a6   :  { %v612_v17 = vpop.eup %611  ;;  %v247_v38 = vmul.f32 0.8992126, %v223_v2  ;;  %v160_v58 = vadd.f32 %v151_v30, %v815_v62 }
 0x1a7   :  { %v464_v26 = vadd.f32 %v456_v47, %v260_v56  ;;  %v253_v43 = vsub.f32 %v237_v60, %v245_v63  ;;  %v614_v32 = vpop.eup %613  ;;  %v349_v22 = vmul.f32 0.6931472, %v612_v17 }
 0x1a8   :  { %v413_v28 = vpop.xlane.xlu1 %412  ;;  %v153_v14 = vmul.f32 0.6931472, %v614_v32  ;;  %v262_v20 = vadd.f32 %v254_v27, %v160_v58  ;;  %v255_v16 = vsub.f32 %v239_v35, %v247_v38 }
 0x1a9   :  { %v496_v15 = vrot.slane %v464_v26, %v984_v33  ;;  %v441_v53 = vmul.f32 0.8992126, %v413_v28  ;;  %v261_v48 = vadd.f32 %v253_v43, %v159_v29  ;;  %v358_v3 = vadd.f32 %v349_v22, %v813_v61 }
 0x1aa   :  { %v616_v44 = vpop.eup %615  ;;  %v161_v23 = vadd.f32 %v153_v14, %v823_v9 }
 0x1ab   :  { %v449_v36 = vsub.f32 %v433_v13, %v441_v53  ;;  %v516_v34 = vsel %vm515_vm7, %v496_v15, %v514_v4  ;;  %v351_v59 = vmul.f32 0.6931472, %v616_v44 }
 0x1ac   :  { %v416_v37 = vpop.xlane.xlu1 %415  ;;  %v263_v61 = vadd.f32 %v255_v16, %v161_v23 }
 0x1ad   :  { %v457_v46 = vadd.f32 %v449_v36, %v357_v11  ;;  %v442_v8 = vmul.f32 0.8992126, %v416_v37  ;;  %v359_v62 = vadd.f32 %v351_v59, %v819_v1  ;;  %v468_v1 = vld [vmem:[%s1042_s3] sm:$0xff] }
 0x1af   :  { %v465_v54 = vadd.f32 %v457_v46, %v261_v48  ;;  %v450_v49 = vsub.f32 %v434_v21, %v442_v8 }
 0x1b0   :  { %v419_v24 = vpop.xlane.xlu1 %418 }
 0x1b1   :  { %v500_v40 = vrot.slane %v465_v54, %v984_v33  ;;  %v458_v42 = vadd.f32 %v450_v49, %v358_v3  ;;  %v443_v55 = vmul.f32 0.8992126, %v419_v24 }
 0x1b3   :  { %v466_v50 = vadd.f32 %v458_v42, %v262_v20  ;;  %v451_v39 = vsub.f32 %v435_v41, %v443_v55  ;;  %v518_v18 = vsel %vm517_vm8, %v500_v40, %v516_v34 }
 0x1b5   :  { %v459_v12 = vadd.f32 %v451_v39, %v359_v62  ;;  %v504_v19 = vrot.slane %v466_v50, %v984_v33 }
 0x1b7   :  { %v467_v45 = vadd.f32 %v459_v12, %v263_v61  ;;  %v520_v51 = vsel %vm519_vm9, %v504_v19, %v518_v18 }
 0x1b9   :  { %v508_v31 = vrot.slane %v467_v45, %v984_v33 }
 0x1bb   :  { %v522_v56 = vsel %vm521_vm10, %v508_v31, %v520_v51 }
 0x1bc   :  { %v525_v47 = vsel %vm524_vm11, %v522_v56, 0.0 }
 0x1bd   :  { %526 = vadd.xlane.f32.xlu0 %v525_v47 }
 0x246   :  { %v527_v9 = vpop.xlane.xlu0 %526 }
 0x247   :  { %v528_v63 = vadd.f32 %v527_v9, %v468_v1 }
 0x249   :  { %530 = vst.msk [vmem:[%s1042_s3] sm:$0xff] %vm46_vm3, %v528_v63 }
 0x250   :  { %v534_v4 = vld [vmem:[%s1042_s3] sm:$0xff] }
 0x251   :  { %v535_v33 = vmul.f32 0.001953125, %v534_v4 }
 0x253   :  { %536 = vst.msk [vmem:[%s1042_s3] sm:$0xff] %vm46_vm3, %v535_v33 }
 0x254   :  { %541 = vsyncpa [#allocation3], 1 }
 0x255   :  { %542 = vsyncpa [#allocation5], 1 }

</bundles_post_ra>
